<compile_context>
chip_gen: v7x
topology: tpu7x:2x2x1
jax: 0.10.0
libtpu: 0.0.40
codegen_flags: <defaults>
</compile_context>

<pallas_src>
import jax
import jax.numpy as jnp
from jax.experimental import pallas as pl
from jax.experimental.pallas import tpu as pltpu


# -----------------------------------------------------------------------------
# Retina.foveate  (plain-JAX glue: dynamic slicing + average pooling)
# -----------------------------------------------------------------------------
def _denormalize(H, coords):
    # torch: (0.5 * ((coords + 1.0) * H)).long()
    # astype(int32) truncates toward zero, exactly matching .long(); for
    # coords in [-1, 1] the argument is >= 0 so trunc == floor as well.
    return (0.5 * ((coords + 1.0) * H)).astype(jnp.int32)


def _extract_patch(x, l, size):
    B, C, H, W = x.shape
    start = _denormalize(H, l)          # (B, 2); [:, 0] = col, [:, 1] = row
    pad = size // 2
    xp = jnp.pad(x, ((0, 0), (0, 0), (pad, pad), (pad, pad)))

    def one(xi, si):
        return jax.lax.dynamic_slice(xi, (0, si[1], si[0]), (C, size, size))

    return jax.vmap(one)(xp, start)     # (B, C, size, size)


def foveate(x, l, *, g, k, s):
    phi = []
    size = g
    for _ in range(k):
        phi.append(_extract_patch(x, l, size))
        size = int(s * size)
    for i in range(1, len(phi)):
        factor = phi[i].shape[-1] // g
        B, C, S, _ = phi[i].shape
        # F.avg_pool2d(patch, factor)  (stride == kernel, exact tiling)
        phi[i] = phi[i].reshape(B, C, g, factor, g, factor).mean(axis=(3, 5))
    phi = jnp.concatenate(phi, axis=1)          # (B, k*C, g, g)
    return phi.reshape(phi.shape[0], -1)        # (B, k*C*g*g)


# -----------------------------------------------------------------------------
# Pallas kernel: fc1/relu, fc2/relu (VPU), fused fc3+fc4, final relu
# -----------------------------------------------------------------------------
def glimpse_kernel(phi_ref, l_ref,
                   w1_ref, b1_ref, w2_ref, b2_ref,
                   w34_ref, b34_ref,
                   out_ref):
    phi = phi_ref[...]                                   # (Bp, D_in)   bf16
    loc = l_ref[...]                                     # (Bp, 2)      f32

    # --- glimpse path: bf16 operands, f32 accumulation, f32 bias/ReLU ------
    h_g = jnp.maximum(
        jnp.dot(phi, w1_ref[...], preferred_element_type=jnp.float32)
        + b1_ref[...], 0.0)                              # (Bp, h_g)    f32

    # --- location path: K=2 contraction done on the VPU (two FMAs) --------
    w2 = w2_ref[...]                                     # (2, h_l)     f32
    h_l = jnp.maximum(
        loc[:, 0:1] * w2[0:1, :] + loc[:, 1:2] * w2[1:2, :] + b2_ref[...],
        0.0)                                             # (Bp, h_l)    f32

    # --- fused what + where: one K = h_g + h_l MXU contraction ------------
    hgl = jnp.concatenate(
        [h_g.astype(jnp.bfloat16), h_l.astype(jnp.bfloat16)], axis=-1)
    out = (jnp.dot(hgl, w34_ref[...], preferred_element_type=jnp.float32)
           + b34_ref[...])                               # (Bp, n_hiddens)
    out_ref[...] = jnp.maximum(out, 0.0)


def prepare_params(params):
    """One-time weight preprocessing: fuse fc3/fc4, cast matmul operands bf16."""
    w34 = jnp.concatenate([params["w3"], params["w4"]], axis=0)   # (h_g+h_l, n)
    b34 = params["b3"] + params["b4"]                             # (1, n)
    return dict(
        w1=params["w1"].astype(jnp.bfloat16),
        b1=params["b1"].astype(jnp.float32),
        w2=params["w2"].astype(jnp.float32),
        b2=params["b2"].astype(jnp.float32),
        w34=w34.astype(jnp.bfloat16),
        b34=b34.astype(jnp.float32),
    )


def glimpse_network_forward(x, l_t_prev, kparams, *, g, k, s):
    phi = foveate(x, l_t_prev, g=g, k=k, s=s)             # (B, k*C*g*g) f32
    l_flat = l_t_prev.reshape(l_t_prev.shape[0], -1)      # (B, 2)
    B, D_in = phi.shape
    h_g = kparams["w1"].shape[1]
    h_l = kparams["w2"].shape[1]
    n_hiddens = kparams["w34"].shape[1]

    # Pad the batch up to a sublane granule (multiple of 8).
    Bp = max(8, -(-B // 8) * 8)
    if Bp != B:
        phi = jnp.pad(phi, ((0, Bp - B), (0, 0)))
        l_flat = jnp.pad(l_flat, ((0, Bp - B), (0, 0)))

    phi = phi.astype(jnp.bfloat16)
    l_flat = l_flat.astype(jnp.float32)

    vmem = pl.BlockSpec(memory_space=pltpu.MemorySpace.VMEM)
    inputs = (phi, l_flat,
              kparams["w1"], kparams["b1"], kparams["w2"], kparams["b2"],
              kparams["w34"], kparams["b34"])

    flops = 2 * Bp * (D_in * h_g + (h_g + h_l) * n_hiddens) + 2 * Bp * 2 * h_l
    bytes_accessed = (phi.size * 2 + l_flat.size * 4
                      + kparams["w1"].size * 2 + kparams["b1"].size * 4
                      + kparams["w2"].size * 4 + kparams["b2"].size * 4
                      + kparams["w34"].size * 2 + kparams["b34"].size * 4
                      + Bp * n_hiddens * 4)

    out = pl.pallas_call(
        glimpse_kernel,
        out_shape=jax.ShapeDtypeStruct((Bp, n_hiddens), jnp.float32),
        in_specs=[vmem] * len(inputs),
        out_specs=vmem,
        cost_estimate=pl.CostEstimate(
            flops=flops, transcendentals=0, bytes_accessed=bytes_accessed),
    )(*inputs)
    return out[:B]


# -----------------------------------------------------------------------------
# Deterministic parameter init (PyTorch-Linear-style uniform bounds) + driver
# -----------------------------------------------------------------------------
def init_linear(key, d_in, d_out):
    kw, kb = jax.random.split(key)
    bound = 1.0 / jnp.sqrt(jnp.float32(d_in))
    w = jax.random.uniform(kw, (d_in, d_out), jnp.float32, -bound, bound)
    b = jax.random.uniform(kb, (1, d_out), jnp.float32, -bound, bound)
    return w, b


def reference_forward(x, l_t_prev, params, *, g, k, s):
    # pure-JAX f32 reference used only to sanity-check the Pallas kernel
    phi = foveate(x, l_t_prev, g=g, k=k, s=s)
    l_flat = l_t_prev.reshape(l_t_prev.shape[0], -1)
    h_g = jnp.maximum(phi @ params["w1"] + params["b1"], 0.0)
    h_l = jnp.maximum(l_flat @ params["w2"] + params["b2"], 0.0)
    return jnp.maximum(h_g @ params["w3"] + params["b3"]
                       + h_l @ params["w4"] + params["b4"], 0.0)


if __name__ == "__main__":
    # module hyper-params (small, TPU-friendly): g=8, k=2, s=2, c=1
    g, k, s, c = 8, 2, 2, 1
    h_g, h_l, n_hiddens = 128, 128, 128
    B, H, W = 2, 16, 16
    D_in = k * g * g * c                                  # 128

    root = jax.random.PRNGKey(0)
    kx, kl, k1, k2, k3, k4 = jax.random.split(root, 6)

    x = jax.random.normal(kx, (B, c, H, W), jnp.float32)
    l_t_prev = jax.random.uniform(kl, (B, 2), jnp.float32, -1.0, 1.0)

    w1, b1 = init_linear(k1, D_in, h_g)
    w2, b2 = init_linear(k2, 2, h_l)
    w3, b3 = init_linear(k3, h_g, n_hiddens)
    w4, b4 = init_linear(k4, h_l, n_hiddens)
    params = dict(w1=w1, b1=b1, w2=w2, b2=b2, w3=w3, b3=b3, w4=w4, b4=b4)

    kparams = prepare_params(params)   # one-time fuse + bf16 cast

    out = glimpse_network_forward(x, l_t_prev, kparams, g=g, k=k, s=s)
    out = jax.block_until_ready(out)

    ref = reference_forward(x, l_t_prev, params, g=g, k=k, s=s)
    assert out.shape == (B, n_hiddens)
    # bf16 matmul operands -> looser tolerance vs the f32 reference
    assert jnp.allclose(out, ref, atol=2e-2, rtol=2e-2), \
        float(jnp.max(jnp.abs(out - ref)))

    print("KERNEL_OK")
</pallas_src>

<mosaic_0001>
module attributes {stable_mosaic.version = 11 : i64} {
  func.func @glimpse_kernel(%arg0: memref<8x128xbf16, #tpu.memory_space<vmem>>, %arg1: memref<8x2xf32, #tpu.memory_space<vmem>>, %arg2: memref<128x128xbf16, #tpu.memory_space<vmem>>, %arg3: memref<1x128xf32, #tpu.memory_space<vmem>>, %arg4: memref<2x128xf32, #tpu.memory_space<vmem>>, %arg5: memref<1x128xf32, #tpu.memory_space<vmem>>, %arg6: memref<256x128xbf16, #tpu.memory_space<vmem>>, %arg7: memref<1x128xf32, #tpu.memory_space<vmem>>, %arg8: memref<8x128xf32, #tpu.memory_space<vmem>>) attributes {dimension_semantics = [], scalar_prefetch = 0 : i64, scratch_operands = 0 : i64, tpu.core_type = #tpu.core_type<tc>} {
    %c0 = arith.constant 0 : index
    %c0_0 = arith.constant 0 : index
    %0 = vector.load %arg0[%c0, %c0_0] : memref<8x128xbf16, #tpu.memory_space<vmem>>, vector<8x128xbf16>
    %c0_1 = arith.constant 0 : index
    %c0_2 = arith.constant 0 : index
    %1 = vector.load %arg1[%c0_1, %c0_2] : memref<8x2xf32, #tpu.memory_space<vmem>>, vector<8x2xf32>
    %c0_3 = arith.constant 0 : index
    %c0_4 = arith.constant 0 : index
    %2 = vector.load %arg2[%c0_3, %c0_4] : memref<128x128xbf16, #tpu.memory_space<vmem>>, vector<128x128xbf16>
    %cst = arith.constant dense<0.000000e+00> : vector<8x128xf32>
    %3 = tpu.matmul %0, %2, %cst {dimension_numbers = #tpu.dot_dimension_numbers<[1], [0], [0], [1], [0, 0, 1, 1], [], []>} : vector<8x128xbf16>, vector<128x128xbf16>, vector<8x128xf32> -> vector<8x128xf32>
    %c0_5 = arith.constant 0 : index
    %c0_6 = arith.constant 0 : index
    %4 = vector.load %arg3[%c0_5, %c0_6] : memref<1x128xf32, #tpu.memory_space<vmem>>, vector<1x128xf32>
    %5 = vector.broadcast %4 : vector<1x128xf32> to vector<8x128xf32>
    %6 = arith.addf %3, %5 : vector<8x128xf32>
    %cst_7 = arith.constant 0.000000e+00 : f32
    %7 = vector.broadcast %cst_7 : f32 to vector<8x128xf32>
    %8 = arith.maximumf %6, %7 : vector<8x128xf32>
    %c0_8 = arith.constant 0 : index
    %c0_9 = arith.constant 0 : index
    %9 = vector.load %arg4[%c0_8, %c0_9] : memref<2x128xf32, #tpu.memory_space<vmem>>, vector<2x128xf32>
    %10 = vector.extract_strided_slice %1 {offsets = [0, 0], sizes = [8, 1], strides = [1, 1]} : vector<8x2xf32> to vector<8x1xf32>
    %11 = vector.extract_strided_slice %9 {offsets = [0, 0], sizes = [1, 128], strides = [1, 1]} : vector<2x128xf32> to vector<1x128xf32>
    %12 = vector.broadcast %10 : vector<8x1xf32> to vector<8x128xf32>
    %13 = vector.broadcast %11 : vector<1x128xf32> to vector<8x128xf32>
    %14 = arith.mulf %12, %13 : vector<8x128xf32>
    %15 = vector.extract_strided_slice %1 {offsets = [0, 1], sizes = [8, 1], strides = [1, 1]} : vector<8x2xf32> to vector<8x1xf32>
    %16 = vector.extract_strided_slice %9 {offsets = [1, 0], sizes = [1, 128], strides = [1, 1]} : vector<2x128xf32> to vector<1x128xf32>
    %17 = vector.broadcast %15 : vector<8x1xf32> to vector<8x128xf32>
    %18 = vector.broadcast %16 : vector<1x128xf32> to vector<8x128xf32>
    %19 = arith.mulf %17, %18 : vector<8x128xf32>
    %20 = arith.addf %14, %19 : vector<8x128xf32>
    %c0_10 = arith.constant 0 : index
    %c0_11 = arith.constant 0 : index
    %21 = vector.load %arg5[%c0_10, %c0_11] : memref<1x128xf32, #tpu.memory_space<vmem>>, vector<1x128xf32>
    %22 = vector.broadcast %21 : vector<1x128xf32> to vector<8x128xf32>
    %23 = arith.addf %20, %22 : vector<8x128xf32>
    %cst_12 = arith.constant 0.000000e+00 : f32
    %24 = vector.broadcast %cst_12 : f32 to vector<8x128xf32>
    %25 = arith.maximumf %23, %24 : vector<8x128xf32>
    %26 = arith.truncf %8 : vector<8x128xf32> to vector<8x128xbf16>
    %27 = arith.truncf %25 : vector<8x128xf32> to vector<8x128xbf16>
    %28 = tpu.concatenate %26, %27 in 1 : vector<8x128xbf16>, vector<8x128xbf16> -> vector<8x256xbf16>
    %c0_13 = arith.constant 0 : index
    %c0_14 = arith.constant 0 : index
    %29 = vector.load %arg6[%c0_13, %c0_14] : memref<256x128xbf16, #tpu.memory_space<vmem>>, vector<256x128xbf16>
    %cst_15 = arith.constant dense<0.000000e+00> : vector<8x128xf32>
    %30 = tpu.matmul %28, %29, %cst_15 {dimension_numbers = #tpu.dot_dimension_numbers<[1], [0], [0], [1], [0, 0, 1, 1], [], []>} : vector<8x256xbf16>, vector<256x128xbf16>, vector<8x128xf32> -> vector<8x128xf32>
    %c0_16 = arith.constant 0 : index
    %c0_17 = arith.constant 0 : index
    %31 = vector.load %arg7[%c0_16, %c0_17] : memref<1x128xf32, #tpu.memory_space<vmem>>, vector<1x128xf32>
    %32 = vector.broadcast %31 : vector<1x128xf32> to vector<8x128xf32>
    %33 = arith.addf %30, %32 : vector<8x128xf32>
    %cst_18 = arith.constant 0.000000e+00 : f32
    %34 = vector.broadcast %cst_18 : f32 to vector<8x128xf32>
    %35 = arith.maximumf %33, %34 : vector<8x128xf32>
    %c0_19 = arith.constant 0 : index
    %c0_20 = arith.constant 0 : index
    %36 = vector.load %arg8[%c0_19, %c0_20] : memref<8x128xf32, #tpu.memory_space<vmem>>, vector<8x128xf32>
    tpu.vector_store %arg8[%c0_19, %c0_20], %35 {strides = array<i32>} : memref<8x128xf32, #tpu.memory_space<vmem>>, vector<8x128xf32>,
    return
  }
}

</mosaic_0001>

<bundles_post_ra>
// kernel: tpu_custom_call.1
= control target key start
LH: loop header
LB: loop body
LE: loop exit
PB: predicated region body
PF: predicated region fallthrough
CT: control target
= control target key end

     0   :  { %13 = vsyncpa [#allocation3], 0  ;;  %s691_s0 = inlined_call_operand.vmem [shape: bf16[8,128], index: 0, kind: input, shape index: {}]   ;;  %s692_s1 = inlined_call_operand.vmem [shape: f32[8,2], index: 1, kind: input, shape index: {}]   ;;  %s693_s2 = inlined_call_operand.hbm [shape: bf16[128,128], index: 2, kind: input, shape index: {}]   ;;  %s694_s3 = inlined_call_operand.vmem [shape: f32[1,128], index: 3, kind: input, shape index: {}]   ;;  %s695_s4 = inlined_call_operand.vmem [shape: f32[2,128], index: 4, kind: input, shape index: {}]   ;;  %s696_s5 = inlined_call_operand.vmem [shape: f32[1,128], index: 5, kind: input, shape index: {}]   ;;  %s697_s6 = inlined_call_operand.hbm [shape: bf16[256,128], index: 6, kind: input, shape index: {}]   ;;  %s698_s7 = inlined_call_operand.vmem [shape: f32[1,128], index: 7, kind: input, shape index: {}]   ;;  %s699_s8 = inlined_call_operand.hbm [shape: f32[8,128], index: 8, kind: output, shape index: {}]  }
   0x1   :  { %14 = vsyncpa [#allocation6], 0 }
   0x2   :  { %15 = vsyncpa [#allocation4], 0  ;;  %s583_s27 = smov [#allocation2]   ;;  %s511_s9 = scalar_lea.hbm %s693_s2, 1024 }
   0x3   :  { %s25_s28 = sshll.u32 %s583_s27, 4  ;;  %p512_p0 = scmp.ne.s32.totalorder %s693_s2, %s511_s9  ;;  %s26_s28 = int_to_ptr.vmem [resolvable:$true] %s25_s28 }
   0x4   :  { %p515_p1 = scmp.lt.u32.totalorder %s511_s9, %s693_s2 }
   0x6   :  { %p517_p2 = pnand %p515_p1, %p512_p0 }
   0x8   :  { %520 = shalt.err (!%p517_p2)
}
   0x9   :  { %s521_s14 = scalar_lea.vmem %s26_s28, 1024  ;;  %p526_p4 = scmp.lt.s32.totalorder %s26_s28, %s26_s28 }
   0xa   :  { %p522_p3 = scmp.ne.s32.totalorder %s26_s28, %s521_s14  ;;  %p527_p5 = scmp.lt.s32.totalorder %s521_s14, %s521_s14 }
   0xc   :  { %p528_p6 = por %p527_p5, %p526_p4 }
   0xe   :  { %p529_p7 = pnand %p528_p6, %p522_p3 }
  0x10   :  { %532 = shalt.err (!%p529_p7)
}
  0x11   :  { %s584_s15 = smov 64   ;;  %s585_s16 = smov 4  }
  0x12   :  { %31 = dma.hbm_to_vmem [thread:$0]  %s693_s2, 1024, %s26_s28, [#allocation3], %s584_s15, %s584_s15, %s585_s16  }
  0x13   :  { %s586_s19 = smov [#allocation5]   ;;  %s533_s23 = scalar_lea.hbm %s697_s6, 2048 }
  0x14   :  { %s43_s20 = sshll.u32 %s586_s19, 4  ;;  %p534_p8 = scmp.ne.s32.totalorder %s697_s6, %s533_s23  ;;  %s44_s20 = int_to_ptr.vmem [resolvable:$true] %s43_s20 }
  0x15   :  { %p537_p9 = scmp.lt.u32.totalorder %s533_s23, %s697_s6 }
  0x17   :  { %p539_p10 = pnand %p537_p9, %p534_p8 }
  0x19   :  { %542 = shalt.err (!%p539_p10)
}
  0x1a   :  { %s543_s29 = scalar_lea.vmem %s44_s20, 2048  ;;  %p548_p12 = scmp.lt.s32.totalorder %s44_s20, %s44_s20 }
  0x1b   :  { %p544_p11 = scmp.ne.s32.totalorder %s44_s20, %s543_s29  ;;  %p549_p13 = scmp.lt.s32.totalorder %s543_s29, %s543_s29 }
  0x1d   :  { %p550_p0 = por %p549_p13, %p548_p12 }
  0x1f   :  { %p551_p1 = pnand %p550_p0, %p544_p11 }
  0x21   :  { %554 = shalt.err (!%p551_p1)
}
  0x22   :  { %49 = dma.hbm_to_vmem [thread:$0]  %s697_s6, 2048, %s44_s20, [#allocation6], %s584_s15, %s584_s15, %s585_s16  }
  0x23   :  { %577 = dma.done.wait [#allocation3], 1024  }
  0x24   :  { %578 = vsyncadd [#allocation3], 4294966272 }
  0x25   :  { %579 = dma.done.wait [#allocation6], 2048  }
  0x26   :  { %580 = vsyncadd [#allocation6], 4294965248  ;;  %v587_v0 = vmov 0.0   ;;  %vm588_vm0 = vmmov 0   ;;  %v589_v1 = vmov 0   ;;  %v487_v2 = vld [vmem:[#allocation2] sm:$0xff]   ;;  %v179_v29 = vlaneseq }
  0x27   :  { %456 = vmatprep.subr.bf16.mxu0 %v587_v0  ;;  %472 = vmatprep.mubr.msk.bf16.mxu0 %vm588_vm0, %v587_v0  ;;  %v488_v3 = vld [vmem:[#allocation2 + $0x8] sm:$0xff]   ;;  %v489_v4 = vld [vmem:[#allocation2 + $0x10] sm:$0xff]   ;;  %v490_v5 = vld [vmem:[#allocation2 + $0x18] sm:$0xff]   ;;  %v590_v11 = vmov 1   ;;  %s591_s15 = smov [#allocation7]  }
  0x28   :  { %485 = vset.pattern.permute.xlu0 %v589_v1  ;;  %457 = vmatpush3.bf16.msra.mxu0 %v487_v2  ;;  %v60_v6 = vld [vmem:[%s692_s1] sm:$0xff]  ;;  %v497_v9 = vld [vmem:[#allocation5 + $0x48] sm:$0xff]   ;;  %v499_v12 = vld [vmem:[#allocation5 + $0x50] sm:$0xff]   ;;  %v180_v30 = vshrl.u32 %v179_v29, 7  ;;  %s388_s16 = sshll.u32 %s591_s15, 4  ;;  %s389_s16 = int_to_ptr.vmem [resolvable:$true] %s388_s16 }
  0x29   :  { %458 = vmatprep.subr.bf16.mxu0 %v587_v0  ;;  %176 = vperm.xlu0 %485, %v60_v6   ;;  %v495_v7 = vld [vmem:[#allocation5 + $0x40] sm:$0xff]   ;;  %v498_v10 = vld [vmem:[#allocation5 + $0x8] sm:$0xff]   ;;  %v500_v14 = vld [vmem:[#allocation5 + $0x10] sm:$0xff]   ;;  %p560_p3 = scmp.lt.s32.totalorder %s389_s16, %s389_s16 }
  0x2a   :  { %v496_v8 = vld [vmem:[#allocation5] sm:$0xff]   ;;  %434 = vmatprep.subr.bf16.mxu1 %v495_v7  ;;  %v501_v15 = vld [vmem:[#allocation5 + $0x58] sm:$0xff]   ;;  %v492_v16 = vld [vmem:[#allocation2 + $0x28] sm:$0xff]   ;;  %v181_v31 = vsub.s32 0, %v180_v30  ;;  %v190_v33 = vsub.s32 1, %v180_v30 }
  0x2b   :  { %435 = vmatpush3.bf16.msra.mxu1 %v496_v8  ;;  %v491_v13 = vld [vmem:[#allocation2 + $0x20] sm:$0xff]   ;;  %v502_v17 = vld [vmem:[#allocation5 + $0x18] sm:$0xff]   ;;  %v493_v19 = vld [vmem:[#allocation2 + $0x30] sm:$0xff]  }
  0x2c   :  { %459 = vmatpush3.bf16.msra.mxu0 %v488_v3  ;;  %436 = vmatprep.subr.bf16.mxu1 %v497_v9  ;;  %v503_v18 = vld [vmem:[#allocation5 + $0x60] sm:$0xff]   ;;  %v505_v21 = vld [vmem:[#allocation5 + $0x68] sm:$0xff]   ;;  %v494_v22 = vld [vmem:[#allocation2 + $0x38] sm:$0xff]  }
  0x2d   :  { %460 = vmatprep.subr.bf16.mxu0 %v587_v0  ;;  %486 = vset.pattern.permute.xlu0 %v590_v11  ;;  %v504_v20 = vld [vmem:[#allocation5 + $0x20] sm:$0xff]   ;;  %v506_v23 = vld [vmem:[#allocation5 + $0x28] sm:$0xff]   ;;  %v507_v24 = vld [vmem:[#allocation5 + $0x70] sm:$0xff]  }
  0x2e   :  { %185 = vperm.xlu0 %486, %v60_v6   ;;  %v59_v25 = vld [vmem:[%s691_s0] sm:$0xf]  ;;  %v508_v26 = vld [vmem:[#allocation5 + $0x30] sm:$0xff]   ;;  %v509_v27 = vld [vmem:[#allocation5 + $0x78] sm:$0xff]  }
  0x2f   :  { %437 = vmatpush3.bf16.msra.mxu1 %v498_v10  ;;  %v510_v28 = vld [vmem:[#allocation5 + $0x38] sm:$0xff]   ;;  %v173_v32 = vld [vmem:[%s695_s4] sm:$0x3] }
  0x30   :  { %461 = vmatpush3.bf16.msra.mxu0 %v489_v4  ;;  %438 = vmatprep.subr.bf16.mxu1 %v499_v12  ;;  %v182_v34 = vrot.slane %v173_v32, %v181_v31  ;;  %v191_v36 = vrot.slane %v173_v32, %v190_v33  ;;  %v407_v40 = vld [vmem:[%s696_s5] ss:$0 sm:$0xff] }
  0x31   :  { %462 = vmatprep.subr.bf16.mxu0 %v587_v0  ;;  %v398_v45 = vld [vmem:[%s694_s3] ss:$0 sm:$0xff]  ;;  %s555_s3 = scalar_lea.vmem %s389_s16, 128 }
  0x32   :  { %v408_v54 = vld [vmem:[%s698_s7] ss:$0 sm:$0xff]  ;;  %p556_p2 = scmp.ne.s32.totalorder %s389_s16, %s555_s3  ;;  %p561_p4 = scmp.lt.s32.totalorder %s555_s3, %s555_s3 }
  0x33   :  { %439 = vmatpush3.bf16.msra.mxu1 %v500_v14 }
  0x34   :  { %463 = vmatpush3.bf16.msra.mxu0 %v490_v5  ;;  %440 = vmatprep.subr.bf16.mxu1 %v501_v15  ;;  %p562_p5 = por %p561_p4, %p560_p3 }
  0x35   :  { %464 = vmatprep.subr.bf16.mxu0 %v587_v0 }
  0x36   :  { %p563_p6 = pnand %p562_p5, %p556_p2 }
  0x37   :  { %441 = vmatpush3.bf16.msra.mxu1 %v502_v17 }
  0x38   :  { %465 = vmatpush3.bf16.msra.mxu0 %v491_v13  ;;  %442 = vmatprep.subr.bf16.mxu1 %v503_v18 }
  0x39   :  { %466 = vmatprep.subr.bf16.mxu0 %v587_v0 }
  0x3b   :  { %443 = vmatpush3.bf16.msra.mxu1 %v504_v20 }
  0x3c   :  { %467 = vmatpush3.bf16.msra.mxu0 %v492_v16  ;;  %444 = vmatprep.subr.bf16.mxu1 %v505_v21 }
  0x3d   :  { %468 = vmatprep.subr.bf16.mxu0 %v587_v0 }
  0x3f   :  { %445 = vmatpush3.bf16.msra.mxu1 %v506_v23 }
  0x40   :  { %469 = vmatpush3.bf16.msra.mxu0 %v493_v19  ;;  %446 = vmatprep.subr.bf16.mxu1 %v507_v24 }
  0x41   :  { %470 = vmatprep.subr.bf16.mxu0 %v587_v0 }
  0x43   :  { %447 = vmatpush3.bf16.msra.mxu1 %v508_v26 }
  0x44   :  { %471 = vmatpush3.bf16.msra.mxu0 %v494_v22  ;;  %448 = vmatprep.subr.bf16.mxu1 %v509_v27 }
  0x47   :  { %473 = vmatmul.mubr.bf16.vlgmr.msra.gmra.mrb[0].mxu0 %v59_v25  ;;  %449 = vmatpush3.bf16.msra.mxu1 %v510_v28 }
  0xa8   :  { %v177_v35 = vpop.permute.xlu0 %176 }
  0xa9   :  { %v183_v37 = vmul.f32 %v182_v34, %v177_v35 }
  0xad   :  { %v186_v38 = vpop.permute.xlu0 %185 }
  0xae   :  { %v192_v39 = vmul.f32 %v191_v36, %v186_v38 }
  0xb0   :  { %v193_v41 = vadd.f32 %v192_v39, %v183_v37 }
  0xb2   :  { %v201_v42 = vadd.f32 %v407_v40, %v193_v41 }
  0xb4   :  { %v202_v43 = vmax.f32 %v201_v42, 0.0 }
  0xb6   :  { %v204_v44 = vpack.c.bf16 %v202_v43, %v202_v43 }
  0xb8   :  { %372 = vmatprep.mubr.bf16.mxu1 %v204_v44 }
 0x11a   :  { %v166_v46 = vpop.f32.mrb[0].mxu0 }
 0x11b   :  { %v167_v47 = vadd.f32 %v398_v45, %v166_v46  ;;  %v474_v48 = vpop.f32.mrb[1].mxu0 }
 0x11c   :  { %v169_v49 = vpop.f32.mrb[2].mxu0 }
 0x11d   :  { %v172_v50 = vmax.f32 %v167_v47, 0.0  ;;  %v475_v51 = vpop.f32.mrb[3].mxu0 }
 0x11f   :  { %v203_v52 = vpack.c.bf16 %v172_v50, %v172_v50 }
 0x121   :  { %373 = vmatmul.mubr.bf16.vlgmr.msra.gmra.mrb[0].mxu1 %v203_v52 }
 0x1f4   :  { %v450_v53 = vpop.f32.mrb[0].mxu1 }
 0x1f5   :  { %v451_v55 = vpop.f32.mrb[1].mxu1 }
 0x1f6   :  { %v452_v56 = vadd.f32 %v451_v55, %v450_v53  ;;  %v453_v57 = vpop.f32.mrb[2].mxu1 }
 0x1f7   :  { %v454_v58 = vpop.f32.mrb[3].mxu1 }
 0x1f8   :  { %v375_v59 = vadd.f32 %v452_v56, %v408_v54 }
 0x1fa   :  { %v380_v60 = vmax.f32 %v375_v59, 0.0 }
 0x1fc   :  { %381 = vst [vmem:[#allocation7] sm:$0xff] %v380_v60 }
 0x1fd   :  { %566 = shalt.err (!%p563_p6)
}
 0x1fe   :  { %s567_s7 = scalar_lea.hbm %s699_s8, 128 }
 0x1ff   :  { %p568_p7 = scmp.ne.s32.totalorder %s699_s8, %s567_s7  ;;  %p571_p8 = scmp.lt.u32.totalorder %s567_s7, %s699_s8 }
 0x201   :  { %p573_p9 = pnand %p571_p8, %p568_p7 }
 0x203   :  { %576 = shalt.err (!%p573_p9)
}
 0x204   :  { %391 = dma.vmem_to_hbm [thread:$0]  %s389_s16, 128, %s699_s8, [#allocation4]  }
 0x205   :  { %581 = dma.done.wait [#allocation4], 128  }
 0x206   :  { %582 = vsyncadd [#allocation4], 4294967168 }
 0x207   :  { %395 = vsyncpa [#allocation3], 1 }
 0x208   :  { %396 = vsyncpa [#allocation6], 1 }
 0x209   :  { %397 = vsyncpa [#allocation4], 1 }

</bundles_post_ra>
